<compile_context>
chip_gen: v7x
topology: tpu7x:2x2x1
jax: 0.10.0
libtpu: 0.0.40
codegen_flags: <defaults>
</compile_context>

<pallas_src>
import functools
import math

import jax
import jax.numpy as jnp
from jax.experimental import pallas as pl
from jax.experimental.pallas import tpu as pltpu

LN_EPS = 1e-12


# --------------------------------------------------------------------------
# Fused kernel: one grid step == one GraphAttention layer over one batch tile.
# --------------------------------------------------------------------------
def _encoder_kernel(x_ref, g_ref, beta_ref, wqkv_ref, bqkv_ref, wd_ref, bd_ref,
                    out_ref, *, batch_tile, seq, hidden, num_heads,
                    compute_dtype):
    layer = pl.program_id(1)
    head_dim = hidden // num_heads
    rows = batch_tile * seq

    # Layer 0 of each batch tile: seed the resident output block (the
    # layer-to-layer accumulator) with the input activations.
    @pl.when(layer == 0)
    def _():
        out_ref[...] = x_ref[...]

    x = out_ref[...]                                            # (rows, H) f32

    # LayerNorm (biased variance, eps inside sqrt); dropout == identity (eval).
    mean = jnp.mean(x, axis=-1, keepdims=True)
    var = jnp.mean(jnp.square(x - mean), axis=-1, keepdims=True)
    h = (x - mean) * jax.lax.rsqrt(var + LN_EPS) * g_ref[0] + beta_ref[0]

    # Fused QKV projection: one MXU pass, compute_dtype operands, f32 accumulate.
    qkv = jnp.dot(h.astype(compute_dtype), wqkv_ref[0],
                  preferred_element_type=jnp.float32) + bqkv_ref[0]

    # Per-head attention from static lane slices (no head transposes); the
    # heads->H concat is folded into the output dense as per-head accumulation.
    # NOTE: static unroll over heads -- fine for typical head counts.
    scale = 1.0 / math.sqrt(head_dim)
    w_dense = wd_ref[0]                                         # (H, H) compute_dtype
    acc = h + bd_ref[0]                                         # residual + dense bias (f32)
    for hd in range(num_heads):
        lo, hi = hd * head_dim, (hd + 1) * head_dim
        q = qkv[:, lo:hi].reshape(batch_tile, seq, head_dim)
        k = qkv[:, hidden + lo:hidden + hi].reshape(batch_tile, seq, head_dim)
        v = qkv[:, 2 * hidden + lo:2 * hidden + hi].reshape(batch_tile, seq, head_dim)

        s = jnp.einsum('bqd,bkd->bqk',
                       q.astype(compute_dtype), k.astype(compute_dtype),
                       preferred_element_type=jnp.float32) * scale
        s = s - jnp.max(s, axis=-1, keepdims=True)
        p = jnp.exp(s)
        p = p * pl.reciprocal(jnp.sum(p, axis=-1, keepdims=True), approx=False)
        ctx = jnp.einsum('bqk,bkd->bqd',
                         p.astype(compute_dtype), v.astype(compute_dtype),
                         preferred_element_type=jnp.float32)
        ctx = ctx.reshape(rows, head_dim).astype(compute_dtype)
        acc = acc + jnp.dot(ctx, w_dense[lo:hi, :],
                            preferred_element_type=jnp.float32)

    out_ref[...] = acc
    # HBM writeback of the resident output block happens automatically when the
    # batch-tile index changes / at grid end (no explicit last-layer guard).


# --------------------------------------------------------------------------
# Wrapper: packs per-layer weights, runs the fused encoder in one pallas_call.
# --------------------------------------------------------------------------
@functools.partial(jax.jit,
                   static_argnames=("num_heads", "compute_dtype", "batch_tiles"))
def graph_conv_encoder(x, layer_params, *, num_heads,
                       compute_dtype=jnp.bfloat16, batch_tiles=1):
    """GraphConvEncoder.forward (NO_PARAMETERS_SHARING, no extra outputs)."""
    B, S, H = x.shape
    L = len(layer_params)
    assert H % num_heads == 0
    assert B % batch_tiles == 0
    rows = B * S
    batch_tile = B // batch_tiles
    rows_tile = batch_tile * S
    head_dim = H // num_heads
    w_dtype = jnp.dtype(compute_dtype)

    # Stack per-layer parameters; fuse Q/K/V weights & biases along columns.
    # Weights live in the compute dtype (halves DMA + VMEM in bf16); LN params
    # and biases stay f32 (added on f32 accumulators).
    g = jnp.stack([p[0] for p in layer_params])                          # (L,1,H)
    beta = jnp.stack([p[1] for p in layer_params])                       # (L,1,H)
    wqkv = jnp.stack([jnp.concatenate([p[2], p[4], p[6]], axis=1)
                      for p in layer_params]).astype(compute_dtype)      # (L,H,3H)
    bqkv = jnp.stack([jnp.concatenate([p[3], p[5], p[7]], axis=1)
                      for p in layer_params])                            # (L,1,3H)
    wd = jnp.stack([p[8] for p in layer_params]).astype(compute_dtype)   # (L,H,H)
    bd = jnp.stack([p[9] for p in layer_params])                         # (L,1,H)

    kernel = functools.partial(_encoder_kernel, batch_tile=batch_tile, seq=S,
                               hidden=H, num_heads=num_heads,
                               compute_dtype=compute_dtype)

    flops = L * (2 * rows * H * 3 * H                       # fused QKV
                 + 4 * B * num_heads * S * S * head_dim     # scores + context
                 + 2 * rows * H * H)                        # output dense
    cost = pl.CostEstimate(
        flops=int(flops),
        transcendentals=int(L * (B * num_heads * S * S + rows)),
        bytes_accessed=int(2 * rows * H * 4                            # x once, out once
                           + batch_tiles * L * (4 * H * H * w_dtype.itemsize
                                                + 6 * H * 4)))         # streamed params

    # VMEM budget: in/out activation blocks + LN/acc temporaries + qkv
    # intermediate + one head of scores/probs + double-buffered weight stream.
    vmem_est = (6 * rows_tile * H * 4
                + rows_tile * 3 * H * 4
                + 2 * batch_tile * S * S * 4
                + 2 * 4 * H * H * w_dtype.itemsize)
    vmem_limit = int(min(max(2 * vmem_est, 32 * 1024 * 1024), 64 * 1024 * 1024))

    x2 = x.reshape(rows, H)                                  # lane-dense 2-D slab

    act_spec = pl.BlockSpec((rows_tile, H), lambda bt, l: (bt, 0))  # resident over layers
    per_layer_vec = pl.BlockSpec((1, 1, H), lambda bt, l: (l, 0, 0))

    out = pl.pallas_call(
        kernel,
        out_shape=jax.ShapeDtypeStruct((rows, H), jnp.float32),
        grid_spec=pltpu.PrefetchScalarGridSpec(
            num_scalar_prefetch=0,
            grid=(batch_tiles, L),
            in_specs=[act_spec,                                             # x
                      per_layer_vec, per_layer_vec,                         # LN gamma/beta
                      pl.BlockSpec((1, H, 3 * H), lambda bt, l: (l, 0, 0)), # Wqkv
                      pl.BlockSpec((1, 1, 3 * H), lambda bt, l: (l, 0, 0)), # bqkv
                      pl.BlockSpec((1, H, H), lambda bt, l: (l, 0, 0)),     # Wdense
                      per_layer_vec],                                       # bdense
            out_specs=act_spec),
        input_output_aliases={0: 0},       # x aliases the output / accumulator buffer
        compiler_params=pltpu.CompilerParams(
            dimension_semantics=("parallel", "arbitrary"),   # batch tiles || , layers seq.
            vmem_limit_bytes=vmem_limit),
        cost_estimate=cost,
    )(x2, g, beta, wqkv, bqkv, wd, bd)
    return out.reshape(B, S, H)


# --------------------------------------------------------------------------
# Deterministic parameter construction (PyTorch Linear layout (out, in),
# pre-transposed so the kernel computes h @ W + b).
# --------------------------------------------------------------------------
def init_layer_params(key, hidden_size):
    keys = jax.random.split(key, 10)

    def lin(kw, kb):
        w = 0.02 * jax.random.normal(kw, (hidden_size, hidden_size), jnp.float32)
        b = 0.02 * jax.random.normal(kb, (1, hidden_size), jnp.float32)
        return w.T, b

    g = 1.0 + 0.05 * jax.random.normal(keys[0], (1, hidden_size), jnp.float32)
    beta = 0.05 * jax.random.normal(keys[1], (1, hidden_size), jnp.float32)
    wq, bq = lin(keys[2], keys[3])
    wk, bk = lin(keys[4], keys[5])
    wv, bv = lin(keys[6], keys[7])
    wd, bd = lin(keys[8], keys[9])
    return (g, beta, wq, bq, wk, bk, wv, bv, wd, bd)


# --------------------------------------------------------------------------
# Pure-JAX reference for correctness checking.
# --------------------------------------------------------------------------
def reference_layer(x, params, num_heads):
    g, beta, wq, bq, wk, bk, wv, bv, wd, bd = params
    B, S, H = x.shape
    Dh = H // num_heads
    mean = jnp.mean(x, axis=-1, keepdims=True)
    var = jnp.mean(jnp.square(x - mean), axis=-1, keepdims=True)
    h = (x - mean) / jnp.sqrt(var + LN_EPS) * g[0] + beta[0]
    q = h @ wq + bq[0]
    k = h @ wk + bk[0]
    v = h @ wv + bv[0]
    qh = q.reshape(B, S, num_heads, Dh).transpose(0, 2, 1, 3)
    kh = k.reshape(B, S, num_heads, Dh).transpose(0, 2, 1, 3)
    vh = v.reshape(B, S, num_heads, Dh).transpose(0, 2, 1, 3)
    scores = jnp.einsum('bnqd,bnkd->bnqk', qh, kh) / math.sqrt(Dh)
    probs = jax.nn.softmax(scores, axis=-1)
    ctx = jnp.einsum('bnqk,bnkd->bnqd', probs, vh)
    ctx = ctx.transpose(0, 2, 1, 3).reshape(B, S, H)
    return ctx @ wd + bd[0] + h


def reference_encoder(x, layer_params, num_heads):
    for params in layer_params:
        x = reference_layer(x, params, num_heads)
    return x


if __name__ == "__main__":
    num_hidden_layers = 2
    num_attention_heads = 4
    hidden_size = 32
    batch, seq = 2, 8

    root = jax.random.PRNGKey(0)
    k_x, k_p = jax.random.split(root)
    x = jax.random.normal(k_x, (batch, seq, hidden_size), jnp.float32)

    layer_keys = jax.random.split(k_p, num_hidden_layers)
    layer_params = [init_layer_params(k, hidden_size) for k in layer_keys]

    ref = reference_encoder(x, layer_params, num_attention_heads)

    # f32 compute path, single batch tile: tight algorithmic parity check.
    out_f32 = graph_conv_encoder(x, layer_params, num_heads=num_attention_heads,
                                 compute_dtype=jnp.float32, batch_tiles=1)
    out_f32 = jax.block_until_ready(out_f32)
    assert out_f32.shape == (batch, seq, hidden_size)
    assert jnp.allclose(out_f32, ref, atol=2e-4, rtol=2e-4), "f32 mismatch vs reference"

    # Deployment path: bf16 MXU operands + per-batch-element parallel grid tiles
    # (feeds both v7x TensorCores). Looser tolerance for bf16 matmul operands.
    out_bf16 = graph_conv_encoder(x, layer_params, num_heads=num_attention_heads,
                                  compute_dtype=jnp.bfloat16, batch_tiles=2)
    out_bf16 = jax.block_until_ready(out_bf16)
    assert out_bf16.shape == (batch, seq, hidden_size)
    assert jnp.allclose(out_bf16, ref, atol=2e-2, rtol=2e-2), "bf16 mismatch vs reference"

    print("KERNEL_OK")
</pallas_src>

<mosaic_0001>
module attributes {stable_mosaic.version = 11 : i64} {
  func.func @_encoder_kernel(%arg0: i32, %arg1: i32, %arg2: memref<16x32xf32, #tpu.memory_space<vmem>>, %arg3: memref<1x1x32xf32, #tpu.memory_space<vmem>>, %arg4: memref<1x1x32xf32, #tpu.memory_space<vmem>>, %arg5: memref<1x32x96xf32, #tpu.memory_space<vmem>>, %arg6: memref<1x1x96xf32, #tpu.memory_space<vmem>>, %arg7: memref<1x32x32xf32, #tpu.memory_space<vmem>>, %arg8: memref<1x1x32xf32, #tpu.memory_space<vmem>>, %arg9: memref<16x32xf32, #tpu.memory_space<vmem>>) attributes {dimension_semantics = [#tpu.dimension_semantics<parallel>, #tpu.dimension_semantics<arbitrary>], iteration_bounds = array<i64: 1, 2>, scalar_prefetch = 0 : i64, scratch_operands = 0 : i64, tpu.core_type = #tpu.core_type<tc>, window_params = [{transform_indices = @transform_0, window_bounds = array<i64: 16, 32>}, {transform_indices = @transform_1, window_bounds = array<i64: 1, 1, 32>}, {transform_indices = @transform_2, window_bounds = array<i64: 1, 1, 32>}, {transform_indices = @transform_3, window_bounds = array<i64: 1, 32, 96>}, {transform_indices = @transform_4, window_bounds = array<i64: 1, 1, 96>}, {transform_indices = @transform_5, window_bounds = array<i64: 1, 32, 32>}, {transform_indices = @transform_6, window_bounds = array<i64: 1, 1, 32>}, {transform_indices = @transform_7, window_bounds = array<i64: 16, 32>}]} {
    %c0_i32 = arith.constant 0 : i32
    %0 = arith.cmpi eq, %arg1, %c0_i32 : i32
    %1 = arith.extui %0 : i1 to i32
    %c0_i32_0 = arith.constant 0 : i32
    %2 = arith.cmpi ne, %1, %c0_i32_0 : i32
    scf.if %2 {
      %c0_51 = arith.constant 0 : index
      %c0_52 = arith.constant 0 : index
      %140 = vector.load %arg2[%c0_51, %c0_52] : memref<16x32xf32, #tpu.memory_space<vmem>>, vector<16x32xf32>
      %c0_53 = arith.constant 0 : index
      %c0_54 = arith.constant 0 : index
      %141 = vector.load %arg9[%c0_53, %c0_54] : memref<16x32xf32, #tpu.memory_space<vmem>>, vector<16x32xf32>
      tpu.vector_store %arg9[%c0_53, %c0_54], %140 {strides = array<i32>} : memref<16x32xf32, #tpu.memory_space<vmem>>, vector<16x32xf32>,
    } else {
    }
    %c0 = arith.constant 0 : index
    %c0_1 = arith.constant 0 : index
    %3 = vector.load %arg9[%c0, %c0_1] : memref<16x32xf32, #tpu.memory_space<vmem>>, vector<16x32xf32>
    %cst = arith.constant dense<0.000000e+00> : vector<16xf32>
    %4 = vector.multi_reduction <add>, %3, %cst [1] : vector<16x32xf32> to vector<16xf32>
    %5 = vector.shape_cast %4 : vector<16xf32> to vector<16x1xf32>
    %cst_2 = arith.constant 3.200000e+01 : f32
    %6 = vector.broadcast %cst_2 : f32 to vector<16x1xf32>
    %7 = arith.divf %5, %6 : vector<16x1xf32>
    %8 = vector.broadcast %7 : vector<16x1xf32> to vector<16x32xf32>
    %9 = arith.subf %3, %8 : vector<16x32xf32>
    %10 = arith.mulf %9, %9 : vector<16x32xf32>
    %cst_3 = arith.constant dense<0.000000e+00> : vector<16xf32>
    %11 = vector.multi_reduction <add>, %10, %cst_3 [1] : vector<16x32xf32> to vector<16xf32>
    %12 = vector.shape_cast %11 : vector<16xf32> to vector<16x1xf32>
    %cst_4 = arith.constant 3.200000e+01 : f32
    %13 = vector.broadcast %cst_4 : f32 to vector<16x1xf32>
    %14 = arith.divf %12, %13 : vector<16x1xf32>
    %15 = vector.broadcast %7 : vector<16x1xf32> to vector<16x32xf32>
    %16 = arith.subf %3, %15 : vector<16x32xf32>
    %cst_5 = arith.constant 9.99999996E-13 : f32
    %17 = vector.broadcast %cst_5 : f32 to vector<16x1xf32>
    %18 = arith.addf %14, %17 : vector<16x1xf32>
    %19 = math.rsqrt %18 : vector<16x1xf32>
    %20 = vector.broadcast %19 : vector<16x1xf32> to vector<16x32xf32>
    %21 = arith.mulf %16, %20 : vector<16x32xf32>
    %c0_6 = arith.constant 0 : index
    %c0_7 = arith.constant 0 : index
    %c0_8 = arith.constant 0 : index
    %22 = vector.load %arg3[%c0_6, %c0_7, %c0_8] : memref<1x1x32xf32, #tpu.memory_space<vmem>>, vector<1x1x32xf32>
    %23 = vector.shape_cast %22 : vector<1x1x32xf32> to vector<1x32xf32>
    %24 = vector.broadcast %23 : vector<1x32xf32> to vector<16x32xf32>
    %25 = arith.mulf %21, %24 : vector<16x32xf32>
    %c0_9 = arith.constant 0 : index
    %c0_10 = arith.constant 0 : index
    %c0_11 = arith.constant 0 : index
    %26 = vector.load %arg4[%c0_9, %c0_10, %c0_11] : memref<1x1x32xf32, #tpu.memory_space<vmem>>, vector<1x1x32xf32>
    %27 = vector.shape_cast %26 : vector<1x1x32xf32> to vector<1x32xf32>
    %28 = vector.broadcast %27 : vector<1x32xf32> to vector<16x32xf32>
    %29 = arith.addf %25, %28 : vector<16x32xf32>
    %c0_12 = arith.constant 0 : index
    %c0_13 = arith.constant 0 : index
    %c0_14 = arith.constant 0 : index
    %30 = vector.load %arg5[%c0_12, %c0_13, %c0_14] : memref<1x32x96xf32, #tpu.memory_space<vmem>>, vector<1x32x96xf32>
    %31 = vector.shape_cast %30 : vector<1x32x96xf32> to vector<32x96xf32>
    %cst_15 = arith.constant dense<0.000000e+00> : vector<16x96xf32>
    %32 = tpu.matmul %29, %31, %cst_15 {dimension_numbers = #tpu.dot_dimension_numbers<[1], [0], [0], [1], [0, 0, 1, 1], [], []>} : vector<16x32xf32>, vector<32x96xf32>, vector<16x96xf32> -> vector<16x96xf32>
    %c0_16 = arith.constant 0 : index
    %c0_17 = arith.constant 0 : index
    %c0_18 = arith.constant 0 : index
    %33 = vector.load %arg6[%c0_16, %c0_17, %c0_18] : memref<1x1x96xf32, #tpu.memory_space<vmem>>, vector<1x1x96xf32>
    %34 = vector.shape_cast %33 : vector<1x1x96xf32> to vector<1x96xf32>
    %35 = vector.broadcast %34 : vector<1x96xf32> to vector<16x96xf32>
    %36 = arith.addf %32, %35 : vector<16x96xf32>
    %c0_19 = arith.constant 0 : index
    %c0_20 = arith.constant 0 : index
    %c0_21 = arith.constant 0 : index
    %37 = vector.load %arg7[%c0_19, %c0_20, %c0_21] : memref<1x32x32xf32, #tpu.memory_space<vmem>>, vector<1x32x32xf32>
    %38 = vector.shape_cast %37 : vector<1x32x32xf32> to vector<32x32xf32>
    %c0_22 = arith.constant 0 : index
    %c0_23 = arith.constant 0 : index
    %c0_24 = arith.constant 0 : index
    %39 = vector.load %arg8[%c0_22, %c0_23, %c0_24] : memref<1x1x32xf32, #tpu.memory_space<vmem>>, vector<1x1x32xf32>
    %40 = vector.shape_cast %39 : vector<1x1x32xf32> to vector<1x32xf32>
    %41 = vector.broadcast %40 : vector<1x32xf32> to vector<16x32xf32>
    %42 = arith.addf %29, %41 : vector<16x32xf32>
    %43 = vector.extract_strided_slice %36 {offsets = [0, 0], sizes = [16, 8], strides = [1, 1]} : vector<16x96xf32> to vector<16x8xf32>
    %44 = vector.shape_cast %43 : vector<16x8xf32> to vector<2x8x8xf32>
    %45 = vector.extract_strided_slice %36 {offsets = [0, 32], sizes = [16, 8], strides = [1, 1]} : vector<16x96xf32> to vector<16x8xf32>
    %46 = vector.shape_cast %45 : vector<16x8xf32> to vector<2x8x8xf32>
    %47 = vector.extract_strided_slice %36 {offsets = [0, 64], sizes = [16, 8], strides = [1, 1]} : vector<16x96xf32> to vector<16x8xf32>
    %48 = vector.shape_cast %47 : vector<16x8xf32> to vector<2x8x8xf32>
    "tpu.trace_start"() <{level = 10 : i32, message = "bqd,bkd->bqk"}> : () -> ()
    %cst_25 = arith.constant dense<0.000000e+00> : vector<2x8x8xf32>
    %49 = tpu.matmul %44, %46, %cst_25 {dimension_numbers = #tpu.dot_dimension_numbers<[2], [2], [1], [1], [0, 0, 0, 1, 1, 1], [0], [0]>} : vector<2x8x8xf32>, vector<2x8x8xf32>, vector<2x8x8xf32> -> vector<2x8x8xf32>
    "tpu.trace_stop"() : () -> ()
    %cst_26 = arith.constant 0.353553385 : f32
    %50 = vector.broadcast %cst_26 : f32 to vector<2x8x8xf32>
    %51 = arith.mulf %49, %50 : vector<2x8x8xf32>
    %cst_27 = arith.constant dense<0xFF800000> : vector<2x8xf32>
    %52 = vector.multi_reduction <maximumf>, %51, %cst_27 [2] : vector<2x8x8xf32> to vector<2x8xf32>
    %53 = vector.shape_cast %52 : vector<2x8xf32> to vector<2x8x1xf32>
    %54 = vector.broadcast %53 : vector<2x8x1xf32> to vector<2x8x8xf32>
    %55 = arith.subf %51, %54 : vector<2x8x8xf32>
    %56 = math.exp %55 : vector<2x8x8xf32>
    %cst_28 = arith.constant dense<0.000000e+00> : vector<2x8xf32>
    %57 = vector.multi_reduction <add>, %56, %cst_28 [2] : vector<2x8x8xf32> to vector<2x8xf32>
    %58 = vector.shape_cast %57 : vector<2x8xf32> to vector<2x8x1xf32>
    %59 = tpu.reciprocal %58 : vector<2x8x1xf32> -> vector<2x8x1xf32>
    %60 = vector.broadcast %59 : vector<2x8x1xf32> to vector<2x8x8xf32>
    %61 = arith.mulf %56, %60 : vector<2x8x8xf32>
    "tpu.trace_start"() <{level = 10 : i32, message = "bqk,bkd->bqd"}> : () -> ()
    %cst_29 = arith.constant dense<0.000000e+00> : vector<2x8x8xf32>
    %62 = tpu.matmul %61, %48, %cst_29 {dimension_numbers = #tpu.dot_dimension_numbers<[2], [1], [1], [2], [0, 0, 0, 1, 1, 2], [0], [0]>} : vector<2x8x8xf32>, vector<2x8x8xf32>, vector<2x8x8xf32> -> vector<2x8x8xf32>
    "tpu.trace_stop"() : () -> ()
    %63 = vector.shape_cast %62 : vector<2x8x8xf32> to vector<16x8xf32>
    %64 = vector.extract_strided_slice %38 {offsets = [0, 0], sizes = [8, 32], strides = [1, 1]} : vector<32x32xf32> to vector<8x32xf32>
    %cst_30 = arith.constant dense<0.000000e+00> : vector<16x32xf32>
    %65 = tpu.matmul %63, %64, %cst_30 {dimension_numbers = #tpu.dot_dimension_numbers<[1], [0], [0], [1], [0, 0, 1, 1], [], []>} : vector<16x8xf32>, vector<8x32xf32>, vector<16x32xf32> -> vector<16x32xf32>
    %66 = arith.addf %42, %65 : vector<16x32xf32>
    %67 = vector.extract_strided_slice %36 {offsets = [0, 8], sizes = [16, 8], strides = [1, 1]} : vector<16x96xf32> to vector<16x8xf32>
    %68 = vector.shape_cast %67 : vector<16x8xf32> to vector<2x8x8xf32>
    %69 = vector.extract_strided_slice %36 {offsets = [0, 40], sizes = [16, 8], strides = [1, 1]} : vector<16x96xf32> to vector<16x8xf32>
    %70 = vector.shape_cast %69 : vector<16x8xf32> to vector<2x8x8xf32>
    %71 = vector.extract_strided_slice %36 {offsets = [0, 72], sizes = [16, 8], strides = [1, 1]} : vector<16x96xf32> to vector<16x8xf32>
    %72 = vector.shape_cast %71 : vector<16x8xf32> to vector<2x8x8xf32>
    "tpu.trace_start"() <{level = 10 : i32, message = "bqd,bkd->bqk"}> : () -> ()
    %cst_31 = arith.constant dense<0.000000e+00> : vector<2x8x8xf32>
    %73 = tpu.matmul %68, %70, %cst_31 {dimension_numbers = #tpu.dot_dimension_numbers<[2], [2], [1], [1], [0, 0, 0, 1, 1, 1], [0], [0]>} : vector<2x8x8xf32>, vector<2x8x8xf32>, vector<2x8x8xf32> -> vector<2x8x8xf32>
    "tpu.trace_stop"() : () -> ()
    %cst_32 = arith.constant 0.353553385 : f32
    %74 = vector.broadcast %cst_32 : f32 to vector<2x8x8xf32>
    %75 = arith.mulf %73, %74 : vector<2x8x8xf32>
    %cst_33 = arith.constant dense<0xFF800000> : vector<2x8xf32>
    %76 = vector.multi_reduction <maximumf>, %75, %cst_33 [2] : vector<2x8x8xf32> to vector<2x8xf32>
    %77 = vector.shape_cast %76 : vector<2x8xf32> to vector<2x8x1xf32>
    %78 = vector.broadcast %77 : vector<2x8x1xf32> to vector<2x8x8xf32>
    %79 = arith.subf %75, %78 : vector<2x8x8xf32>
    %80 = math.exp %79 : vector<2x8x8xf32>
    %cst_34 = arith.constant dense<0.000000e+00> : vector<2x8xf32>
    %81 = vector.multi_reduction <add>, %80, %cst_34 [2] : vector<2x8x8xf32> to vector<2x8xf32>
    %82 = vector.shape_cast %81 : vector<2x8xf32> to vector<2x8x1xf32>
    %83 = tpu.reciprocal %82 : vector<2x8x1xf32> -> vector<2x8x1xf32>
    %84 = vector.broadcast %83 : vector<2x8x1xf32> to vector<2x8x8xf32>
    %85 = arith.mulf %80, %84 : vector<2x8x8xf32>
    "tpu.trace_start"() <{level = 10 : i32, message = "bqk,bkd->bqd"}> : () -> ()
    %cst_35 = arith.constant dense<0.000000e+00> : vector<2x8x8xf32>
    %86 = tpu.matmul %85, %72, %cst_35 {dimension_numbers = #tpu.dot_dimension_numbers<[2], [1], [1], [2], [0, 0, 0, 1, 1, 2], [0], [0]>} : vector<2x8x8xf32>, vector<2x8x8xf32>, vector<2x8x8xf32> -> vector<2x8x8xf32>
    "tpu.trace_stop"() : () -> ()
    %87 = vector.shape_cast %86 : vector<2x8x8xf32> to vector<16x8xf32>
    %88 = vector.extract_strided_slice %38 {offsets = [8, 0], sizes = [8, 32], strides = [1, 1]} : vector<32x32xf32> to vector<8x32xf32>
    %cst_36 = arith.constant dense<0.000000e+00> : vector<16x32xf32>
    %89 = tpu.matmul %87, %88, %cst_36 {dimension_numbers = #tpu.dot_dimension_numbers<[1], [0], [0], [1], [0, 0, 1, 1], [], []>} : vector<16x8xf32>, vector<8x32xf32>, vector<16x32xf32> -> vector<16x32xf32>
    %90 = arith.addf %66, %89 : vector<16x32xf32>
    %91 = vector.extract_strided_slice %36 {offsets = [0, 16], sizes = [16, 8], strides = [1, 1]} : vector<16x96xf32> to vector<16x8xf32>
    %92 = vector.shape_cast %91 : vector<16x8xf32> to vector<2x8x8xf32>
    %93 = vector.extract_strided_slice %36 {offsets = [0, 48], sizes = [16, 8], strides = [1, 1]} : vector<16x96xf32> to vector<16x8xf32>
    %94 = vector.shape_cast %93 : vector<16x8xf32> to vector<2x8x8xf32>
    %95 = vector.extract_strided_slice %36 {offsets = [0, 80], sizes = [16, 8], strides = [1, 1]} : vector<16x96xf32> to vector<16x8xf32>
    %96 = vector.shape_cast %95 : vector<16x8xf32> to vector<2x8x8xf32>
    "tpu.trace_start"() <{level = 10 : i32, message = "bqd,bkd->bqk"}> : () -> ()
    %cst_37 = arith.constant dense<0.000000e+00> : vector<2x8x8xf32>
    %97 = tpu.matmul %92, %94, %cst_37 {dimension_numbers = #tpu.dot_dimension_numbers<[2], [2], [1], [1], [0, 0, 0, 1, 1, 1], [0], [0]>} : vector<2x8x8xf32>, vector<2x8x8xf32>, vector<2x8x8xf32> -> vector<2x8x8xf32>
    "tpu.trace_stop"() : () -> ()
    %cst_38 = arith.constant 0.353553385 : f32
    %98 = vector.broadcast %cst_38 : f32 to vector<2x8x8xf32>
    %99 = arith.mulf %97, %98 : vector<2x8x8xf32>
    %cst_39 = arith.constant dense<0xFF800000> : vector<2x8xf32>
    %100 = vector.multi_reduction <maximumf>, %99, %cst_39 [2] : vector<2x8x8xf32> to vector<2x8xf32>
    %101 = vector.shape_cast %100 : vector<2x8xf32> to vector<2x8x1xf32>
    %102 = vector.broadcast %101 : vector<2x8x1xf32> to vector<2x8x8xf32>
    %103 = arith.subf %99, %102 : vector<2x8x8xf32>
    %104 = math.exp %103 : vector<2x8x8xf32>
    %cst_40 = arith.constant dense<0.000000e+00> : vector<2x8xf32>
    %105 = vector.multi_reduction <add>, %104, %cst_40 [2] : vector<2x8x8xf32> to vector<2x8xf32>
    %106 = vector.shape_cast %105 : vector<2x8xf32> to vector<2x8x1xf32>
    %107 = tpu.reciprocal %106 : vector<2x8x1xf32> -> vector<2x8x1xf32>
    %108 = vector.broadcast %107 : vector<2x8x1xf32> to vector<2x8x8xf32>
    %109 = arith.mulf %104, %108 : vector<2x8x8xf32>
    "tpu.trace_start"() <{level = 10 : i32, message = "bqk,bkd->bqd"}> : () -> ()
    %cst_41 = arith.constant dense<0.000000e+00> : vector<2x8x8xf32>
    %110 = tpu.matmul %109, %96, %cst_41 {dimension_numbers = #tpu.dot_dimension_numbers<[2], [1], [1], [2], [0, 0, 0, 1, 1, 2], [0], [0]>} : vector<2x8x8xf32>, vector<2x8x8xf32>, vector<2x8x8xf32> -> vector<2x8x8xf32>
    "tpu.trace_stop"() : () -> ()
    %111 = vector.shape_cast %110 : vector<2x8x8xf32> to vector<16x8xf32>
    %112 = vector.extract_strided_slice %38 {offsets = [16, 0], sizes = [8, 32], strides = [1, 1]} : vector<32x32xf32> to vector<8x32xf32>
    %cst_42 = arith.constant dense<0.000000e+00> : vector<16x32xf32>
    %113 = tpu.matmul %111, %112, %cst_42 {dimension_numbers = #tpu.dot_dimension_numbers<[1], [0], [0], [1], [0, 0, 1, 1], [], []>} : vector<16x8xf32>, vector<8x32xf32>, vector<16x32xf32> -> vector<16x32xf32>
    %114 = arith.addf %90, %113 : vector<16x32xf32>
    %115 = vector.extract_strided_slice %36 {offsets = [0, 24], sizes = [16, 8], strides = [1, 1]} : vector<16x96xf32> to vector<16x8xf32>
    %116 = vector.shape_cast %115 : vector<16x8xf32> to vector<2x8x8xf32>
    %117 = vector.extract_strided_slice %36 {offsets = [0, 56], sizes = [16, 8], strides = [1, 1]} : vector<16x96xf32> to vector<16x8xf32>
    %118 = vector.shape_cast %117 : vector<16x8xf32> to vector<2x8x8xf32>
    %119 = vector.extract_strided_slice %36 {offsets = [0, 88], sizes = [16, 8], strides = [1, 1]} : vector<16x96xf32> to vector<16x8xf32>
    %120 = vector.shape_cast %119 : vector<16x8xf32> to vector<2x8x8xf32>
    "tpu.trace_start"() <{level = 10 : i32, message = "bqd,bkd->bqk"}> : () -> ()
    %cst_43 = arith.constant dense<0.000000e+00> : vector<2x8x8xf32>
    %121 = tpu.matmul %116, %118, %cst_43 {dimension_numbers = #tpu.dot_dimension_numbers<[2], [2], [1], [1], [0, 0, 0, 1, 1, 1], [0], [0]>} : vector<2x8x8xf32>, vector<2x8x8xf32>, vector<2x8x8xf32> -> vector<2x8x8xf32>
    "tpu.trace_stop"() : () -> ()
    %cst_44 = arith.constant 0.353553385 : f32
    %122 = vector.broadcast %cst_44 : f32 to vector<2x8x8xf32>
    %123 = arith.mulf %121, %122 : vector<2x8x8xf32>
    %cst_45 = arith.constant dense<0xFF800000> : vector<2x8xf32>
    %124 = vector.multi_reduction <maximumf>, %123, %cst_45 [2] : vector<2x8x8xf32> to vector<2x8xf32>
    %125 = vector.shape_cast %124 : vector<2x8xf32> to vector<2x8x1xf32>
    %126 = vector.broadcast %125 : vector<2x8x1xf32> to vector<2x8x8xf32>
    %127 = arith.subf %123, %126 : vector<2x8x8xf32>
    %128 = math.exp %127 : vector<2x8x8xf32>
    %cst_46 = arith.constant dense<0.000000e+00> : vector<2x8xf32>
    %129 = vector.multi_reduction <add>, %128, %cst_46 [2] : vector<2x8x8xf32> to vector<2x8xf32>
    %130 = vector.shape_cast %129 : vector<2x8xf32> to vector<2x8x1xf32>
    %131 = tpu.reciprocal %130 : vector<2x8x1xf32> -> vector<2x8x1xf32>
    %132 = vector.broadcast %131 : vector<2x8x1xf32> to vector<2x8x8xf32>
    %133 = arith.mulf %128, %132 : vector<2x8x8xf32>
    "tpu.trace_start"() <{level = 10 : i32, message = "bqk,bkd->bqd"}> : () -> ()
    %cst_47 = arith.constant dense<0.000000e+00> : vector<2x8x8xf32>
    %134 = tpu.matmul %133, %120, %cst_47 {dimension_numbers = #tpu.dot_dimension_numbers<[2], [1], [1], [2], [0, 0, 0, 1, 1, 2], [0], [0]>} : vector<2x8x8xf32>, vector<2x8x8xf32>, vector<2x8x8xf32> -> vector<2x8x8xf32>
    "tpu.trace_stop"() : () -> ()
    %135 = vector.shape_cast %134 : vector<2x8x8xf32> to vector<16x8xf32>
    %136 = vector.extract_strided_slice %38 {offsets = [24, 0], sizes = [8, 32], strides = [1, 1]} : vector<32x32xf32> to vector<8x32xf32>
    %cst_48 = arith.constant dense<0.000000e+00> : vector<16x32xf32>
    %137 = tpu.matmul %135, %136, %cst_48 {dimension_numbers = #tpu.dot_dimension_numbers<[1], [0], [0], [1], [0, 0, 1, 1], [], []>} : vector<16x8xf32>, vector<8x32xf32>, vector<16x32xf32> -> vector<16x32xf32>
    %138 = arith.addf %114, %137 : vector<16x32xf32>
    %c0_49 = arith.constant 0 : index
    %c0_50 = arith.constant 0 : index
    %139 = vector.load %arg9[%c0_49, %c0_50] : memref<16x32xf32, #tpu.memory_space<vmem>>, vector<16x32xf32>
    tpu.vector_store %arg9[%c0_49, %c0_50], %138 {strides = array<i32>} : memref<16x32xf32, #tpu.memory_space<vmem>>, vector<16x32xf32>,
    return
  }
  func.func @transform_0(%arg0: i32, %arg1: i32) -> (i32, i32) {
    %c0_i32 = arith.constant 0 : i32
    %c0_i32_0 = arith.constant 0 : i32
    return %arg0, %c0_i32 : i32, i32
  }
  func.func @transform_1(%arg0: i32, %arg1: i32) -> (i32, i32, i32) {
    %c0_i32 = arith.constant 0 : i32
    %c0_i32_0 = arith.constant 0 : i32
    %c0_i32_1 = arith.constant 0 : i32
    return %arg1, %c0_i32, %c0_i32_0 : i32, i32, i32
  }
  func.func @transform_2(%arg0: i32, %arg1: i32) -> (i32, i32, i32) {
    %c0_i32 = arith.constant 0 : i32
    %c0_i32_0 = arith.constant 0 : i32
    %c0_i32_1 = arith.constant 0 : i32
    return %arg1, %c0_i32, %c0_i32_0 : i32, i32, i32
  }
  func.func @transform_3(%arg0: i32, %arg1: i32) -> (i32, i32, i32) {
    %c0_i32 = arith.constant 0 : i32
    %c0_i32_0 = arith.constant 0 : i32
    %c0_i32_1 = arith.constant 0 : i32
    return %arg1, %c0_i32, %c0_i32_0 : i32, i32, i32
  }
  func.func @transform_4(%arg0: i32, %arg1: i32) -> (i32, i32, i32) {
    %c0_i32 = arith.constant 0 : i32
    %c0_i32_0 = arith.constant 0 : i32
    %c0_i32_1 = arith.constant 0 : i32
    return %arg1, %c0_i32, %c0_i32_0 : i32, i32, i32
  }
  func.func @transform_5(%arg0: i32, %arg1: i32) -> (i32, i32, i32) {
    %c0_i32 = arith.constant 0 : i32
    %c0_i32_0 = arith.constant 0 : i32
    %c0_i32_1 = arith.constant 0 : i32
    return %arg1, %c0_i32, %c0_i32_0 : i32, i32, i32
  }
  func.func @transform_6(%arg0: i32, %arg1: i32) -> (i32, i32, i32) {
    %c0_i32 = arith.constant 0 : i32
    %c0_i32_0 = arith.constant 0 : i32
    %c0_i32_1 = arith.constant 0 : i32
    return %arg1, %c0_i32, %c0_i32_0 : i32, i32, i32
  }
  func.func @transform_7(%arg0: i32, %arg1: i32) -> (i32, i32) {
    %c0_i32 = arith.constant 0 : i32
    %c0_i32_0 = arith.constant 0 : i32
    return %arg0, %c0_i32 : i32, i32
  }
}

</mosaic_0001>

<bundles_post_ra>
// kernel: graph_conv_encoder.1
= control target key start
LH: loop header
LB: loop body
LE: loop exit
PB: predicated region body
PF: predicated region fallthrough
CT: control target
= control target key end

     0   :  { %s2719_s24 = smov 0   ;;  %s2721_s25 = smov 0   ;;  %s2975_s0 = inlined_call_operand.vmem [shape: f32[16,32], index: 0, kind: input, shape index: {}, may-alias: {0,7}]   ;;  %s2976_s1 = inlined_call_operand.vmem [shape: f32[2,1,32], index: 1, kind: input, shape index: {}]   ;;  %s2977_s2 = inlined_call_operand.vmem [shape: f32[2,1,32], index: 2, kind: input, shape index: {}]   ;;  %s2978_s3 = inlined_call_operand.vmem [shape: f32[2,32,96], index: 3, kind: input, shape index: {}]   ;;  %s2979_s4 = inlined_call_operand.vmem [shape: f32[2,1,96], index: 4, kind: input, shape index: {}]   ;;  %s2980_s5 = inlined_call_operand.vmem [shape: f32[2,32,32], index: 5, kind: input, shape index: {}]   ;;  %s2981_s6 = inlined_call_operand.vmem [shape: f32[2,1,32], index: 6, kind: input, shape index: {}]   ;;  %s2982_s7 = inlined_call_operand.vmem [shape: f32[16,32], index: 7, kind: output, shape index: {}, may-alias: {0,7}]  }
   0x1   :  { %s2723_s26 = smov 0  }
   0x2 LB: > { %s26_s27 = sadd.s32 1, %s2660_s25  ;;  %p2342_p0 = scmp.ge.s32.totalorder %s2664_s26, 1  ;;  %s2664_s26 = sphi %s2723_s26, %s17_s26   ;;  %s2660_s25 = sphi %s2721_s25, %s2984_s25   ;;  %s2656_s24 = sphi %s2719_s24, %s2983_s24  }
   0x3   : > { %p27_p1 = scmp.ge.s32.totalorder %s26_s27, 2  ;;  %p302_p2 = scmp.lt.s32.totalorder %s2664_s26, 3 }
   0x5   : > { %s2986_s27 = smov (%p27_p1, %s26_s27), 0  ;;  %p303_p3 = pnand %p2342_p0, %p302_p2 }
   0x6   : > { %p362_p4 = scmp.lt.s32.totalorder (!%p303_p3), %s2656_s24, 1  ;;  %p2347_p5 = scmp.ne.s32.totalorder (!%p303_p3), %s2656_s24, 0 }
   0x7   : > { %306 = sbr.rel (%p303_p3) target bundleno = 3449 (0xd79), region = 48 }
   0xe   : > { %s2737_s28 = scalar_select %p362_p4, %s2656_s24, 1 }
   0xf   : > { %393 = sbr.rel (%p2347_p5) target bundleno = 22 (0x16), region = 52  ;;  %v394_v0 = vld [vmem:[%s2975_s0] sm:$0xff] (!%p2347_p5)  ;;  %vm396_vm0 = vcmask (!%p2347_p5), 261120   ;;  %v395_v1 = vld [vmem:[%s2975_s0 + $0x8] sm:$0xff] (!%p2347_p5) }
  0x10   : > { %s364_s8 = scalar_lea.vmem %s2976_s1, %s2737_s28  ;;  %s367_s11 = scalar_lea.vmem %s2977_s2, %s2737_s28  ;;  %397 = vst.msk [vmem:[%s2982_s7] sm:$0xff] (!%p2347_p5), %vm396_vm0, %v394_v0  ;;  %398 = vst.msk [vmem:[%s2982_s7 + $0x8] sm:$0xff] (!%p2347_p5), %vm396_vm0, %v395_v1 }
  0x11   : > { %s2390_s12 = sshll.u32 %s2737_s28, 5  ;;  %s375_s15 = scalar_lea.vmem %s2979_s4, %s2737_s28 }
  0x12   : > { %s2755_s18 = scalar_lea.vmem %s2978_s3, %s2390_s12  ;;  %s2760_s21 = scalar_lea.vmem %s2980_s5, %s2390_s12 }
  0x13   : > { %s383_s29 = scalar_lea.vmem %s2981_s6, %s2737_s28 }
  0x16 PF: > { %vm401_vm1 = vcmask 261120   ;;  %v447_v16 = vld [vmem:[%s2755_s18] sm:$0xff]  ;;  %v448_v17 = vld [vmem:[%s2755_s18 + $0x8] sm:$0xff]  ;;  %v449_v18 = vld [vmem:[%s2755_s18 + $0x10] sm:$0xff]  ;;  %v2666_v38 = vmov 0.0   ;;  %vm2667_vm2 = vmmov 0  }
  0x17   : > { %v399_v2 = vld [vmem:[%s2982_s7] sm:$0xff]  ;;  %v400_v3 = vld [vmem:[%s2982_s7 + $0x8] sm:$0xff]  ;;  %v2553_v19 = vpack.c.bf16 %v448_v17, %v447_v16  ;;  %v450_v20 = vld [vmem:[%s2755_s18 + $0x18] sm:$0xff]  ;;  %2453 = vmatprep.subr.mxu1 %v2666_v38  ;;  %2455 = vmatprep.mubr.msk.f32.mxu1 %vm2667_vm2, %v2666_v38  ;;  %s2668_s10 = smov 96   ;;  %vm555_vm3 = vcmask 64512   ;;  %s2670_s13 = smov 88  }
  0x18   : > { %v402_v4 = vsel %vm401_vm1, %v399_v2, 0.0  ;;  %v405_v5 = vsel %vm401_vm1, %v400_v3, 0.0  ;;  %v2557_v21 = vpack.c.bf16 %v450_v20, %v449_v18  ;;  %v2348_v29 = vld [vmem:[%s364_s8] ss:$0 sm:$0xff]  ;;  %s2671_s14 = smov 120   ;;  %s2672_s16 = smov 80  }
  0x19   : > { %403 = vadd.xlane.f32.xlu0 %v402_v4  ;;  %2554 = vmatprep.subr.bf16.mxu0 %v2553_v19  ;;  %v2349_v31 = vld [vmem:[%s367_s11] ss:$0 sm:$0xff]  ;;  %s2673_s12 = smov 56   ;;  %s2674_s17 = smov 112  }
  0x1a   : > { %2556 = vmatpush3.bf16.msra.mxu0 %v2553_v19  ;;  %v2350_v39 = vld [vmem:[%s375_s15] ss:$0 sm:$0xff]  ;;  %s2669_s15 = smov 64   ;;  %s2675_s24 = smov 48  }
  0x1b   : > { %2558 = vmatprep.subr.bf16.mxu0 %v2557_v21  ;;  %v539_v0 = vld [vmem:[%s2760_s21] sm:$0xff]  ;;  %s2676_s19 = smov 72   ;;  %s2677_s20 = smov 104  }
  0x1c   : > { %s2678_s22 = smov 40  }
  0x1d   : > { %406 = vadd.xlane.f32.xlu0 %v405_v5 }
  0x1e   : > { %2560 = vmatpush3.bf16.msra.mxu0 %v2557_v21 }
  0x1f   : > { %2473 = vmatprep.subr.mxu0 %v539_v0 }
  0xa6   : > { %v404_v6 = vpop.xlane.xlu0 %403 }
  0xa7   : > { %v409_v7 = vmul.f32 0.03125, %v404_v6 }
  0xa9   : > { %v411_v8 = vsub.f32 %v399_v2, %v409_v7 }
  0xaa   : > { %v407_v9 = vpop.xlane.xlu0 %406 }
  0xab   : > { %v410_v10 = vmul.f32 0.03125, %v407_v9  ;;  %v413_v11 = vmul.f32 %v411_v8, %v411_v8 }
  0xad   : > { %v412_v12 = vsub.f32 %v400_v3, %v410_v10  ;;  %v415_v13 = vsel %vm401_vm1, %v413_v11, 0.0 }
  0xae   : > { %416 = vadd.xlane.f32.xlu1 %v415_v13 }
  0xaf   : > { %v414_v14 = vmul.f32 %v412_v12, %v412_v12 }
  0xb1   : > { %v418_v15 = vsel %vm401_vm1, %v414_v14, 0.0 }
  0xb2   : > { %419 = vadd.xlane.f32.xlu1 %v418_v15 }
 0x13b   : > { %v417_v22 = vpop.xlane.xlu1 %416 }
 0x13c   : > { %v421_v23 = vmul.f32 0.03125, %v417_v22 }
 0x13e   : > { %v423_v24 = vadd.f32 1e-12, %v421_v23 }
 0x13f   : > { %v420_v25 = vpop.xlane.xlu1 %419 }
 0x140   : > { %2606 = vrsqrt.f32 %v423_v24  ;;  %v422_v26 = vmul.f32 0.03125, %v420_v25 }
 0x142   : > { %v424_v27 = vadd.f32 1e-12, %v422_v26 }
 0x144   : > { %2608 = vrsqrt.f32 %v424_v27 }
 0x14a   : > { %v2607_v28 = vpop.eup %2606 }
 0x14b   : > { %v427_v30 = vmul.f32 %v2607_v28, %v411_v8 }
 0x14d   : > { %v436_v32 = vmul.f32 %v2348_v29, %v427_v30 }
 0x14e   : > { %v2609_v33 = vpop.eup %2608 }
 0x14f   : > { %v428_v34 = vmul.f32 %v2609_v33, %v412_v12  ;;  %v2802_v35 = vadd.f32 %v2349_v31, %v436_v32 }
 0x151   : > { %v437_v36 = vmul.f32 %v2348_v29, %v428_v34  ;;  %2450 = vmatprep.mubr.msk.f32.mxu0 %vm401_vm1, %v2802_v35 }
 0x153   : > { %v2806_v37 = vadd.f32 %v2349_v31, %v437_v36 }
 0x155   : > { %2451 = vmatmul.mubr.msk.f32.vlgmr.msra.gmra.mrb[0].mxu0 %vm401_vm1, %v2806_v37 }
 0x156   : > { %2474 = vmatpush3.msra.mxu0 %v539_v0 }
 0x157   : > { %2483 = vmatprep.subr.mxu0 %v2666_v38 }
 0x228   : > { %v2452_v40 = vpop.f32.mrb[0].mxu0 }
 0x229   : > { %v2818_v41 = vadd.f32 %v2452_v40, %v2350_v39  ;;  %v530_v42 = vpop.f32.mrb[1].mxu0 }
 0x22a   : > { %v2820_v43 = vadd.f32 %v2350_v39, %v530_v42 }
 0x22b   : > { %631 = vrot.lane.b32.xlu1 %v2818_v41, %s2668_s10 }
 0x22c   : > { %553 = vrot.lane.b32.xlu0 %v2820_v43, %s2668_s10 }
 0x29d   : > { %v632_v45 = vpop.permute.xlu1 %631 }
 0x29e   : > { %v554_v44 = vpop.permute.xlu0 %553 }
 0x29f   : > { %2454 = vmatpush3.xpose.msk.msra.mxu1 %vm555_vm3, %v554_v44 }
 0x2a0   : > { %2458 = vmatprep.subr.mxu1 %v2666_v38 }
 0x2a2   : > { %2456 = vmatmul.mubr.msk.f32.vlgmr.msra.gmra.mrb[0].mxu1 %vm555_vm3, %v2820_v43 }
 0x2a3   : > { %2459 = vmatpush3.xpose.msk.msra.mxu1 %vm555_vm3, %v632_v45  ;;  %2460 = vmatprep.mubr.msk.f32.mxu1 %vm2667_vm2, %v2666_v38 }
 0x2a4   : > { %2463 = vmatprep.subr.mxu1 %v2666_v38 }
 0x2a6   : > { %2461 = vmatmul.mubr.msk.f32.vlgmr.msra.gmra.mrb[2].mxu1 %vm555_vm3, %v2818_v41 }
 0x2a7   : > { %2465 = vmatprep.mubr.msk.f32.mxu1 %vm2667_vm2, %v2666_v38 }
 0x375   : > { %v626_v46 = vpop.f32.mrb[0].mxu1 }
 0x376   : > { %v707_v47 = vmul.f32 0.35355338, %v626_v46  ;;  %v2457_v48 = vpop.f32.mrb[1].mxu1 }
 0x378   : > { %v709_v49 = vsel %vm555_vm3, %v707_v47, -inf }
 0x379   : > { %710 = vmax.xlane.f32.xlu1 %v709_v49  ;;  %v703_v50 = vpop.f32.mrb[2].mxu1 }
 0x37a   : > { %v708_v51 = vmul.f32 0.35355338, %v703_v50  ;;  %v2462_v52 = vpop.f32.mrb[3].mxu1 }
 0x37c   : > { %v712_v53 = vsel %vm555_vm3, %v708_v51, -inf }
 0x37d   : > { %713 = vmax.xlane.f32.xlu0 %v712_v53 }
 0x406   : > { %v711_v54 = vpop.xlane.xlu1 %710 }
 0x407   : > { %v715_v55 = vsub.f32 %v707_v47, %v711_v54 }
 0x409   : > { %v717_v56 = vmul.f32 1.442695, %v715_v55 }
 0x40a   : > { %v714_v57 = vpop.xlane.xlu0 %713 }
 0x40b   : > { %2610 = vpow2.f32 %v717_v56  ;;  %v716_v58 = vsub.f32 %v708_v51, %v714_v57 }
 0x40d   : > { %v719_v59 = vmul.f32 1.442695, %v716_v58 }
 0x40f   : > { %2612 = vpow2.f32 %v719_v59 }
 0x415   : > { %v2611_v60 = vpop.eup %2610 }
 0x416   : > { %v721_v61 = vsel %vm555_vm3, %v2611_v60, 0.0 }
 0x417   : > { %722 = vadd.xlane.f32.xlu0 %v721_v61 }
 0x419   : > { %v2613_v62 = vpop.eup %2612 }
 0x41a   : > { %v724_v63 = vsel %vm555_vm3, %v2613_v62, 0.0 }
 0x41b   : > { %725 = vadd.xlane.f32.xlu1 %v724_v63  ;;  %v540_v63 = vld [vmem:[%s2760_s21 + $0x8] sm:$0xff] }
 0x42c   : > { %807 = vrot.lane.b32.xlu1 %v2818_v41, %s2669_s15 }
 0x42d   : > { %731 = vrot.lane.b32.xlu0 %v2820_v43, %s2669_s15 }
 0x430   : > { %968 = vrot.lane.b32.xlu1 %v2820_v43, %s2670_s13 }
 0x431   : > { %1046 = vrot.lane.b32.xlu0 %v2818_v41, %s2670_s13 }
 0x434   : > { %966 = vrot.lane.b32.xlu1 %v2820_v43, %s2671_s14 }
 0x438   : > { %1044 = vrot.lane.b32.xlu1 %v2818_v41, %s2671_s14 }
 0x43c   : > { %1383 = vrot.lane.b32.xlu1 %v2820_v43, %s2672_s16 }
 0x4a4   : > { %v723_v1 = vpop.xlane.xlu0 %722 }
 0x4a5   : > { %2614 = vrcp.f32 %v723_v1 }
 0x4a8   : > { %v726_v2 = vpop.xlane.xlu1 %725  ;;  %v732_v3 = vpop.permute.xlu0 %731 }
 0x4a9   : > { %2616 = vrcp.f32 %v726_v2  ;;  %2464 = vmatpush3.msra.mxu1 %v732_v3 }
 0x4aa   : > { %2468 = vmatprep.subr.mxu1 %v2666_v38 }
 0x4ac   : > { %v808_v6 = vpop.permute.xlu1 %807  ;;  %v1047_v14 = vpop.permute.xlu0 %1046 }
 0x4af   : > { %v2615_v4 = vpop.eup %2614 }
 0x4b0   : > { %v729_v5 = vmul.f32 %v2615_v4, %v2611_v60  ;;  %v969_v9 = vpop.permute.xlu1 %968 }
 0x4b2   : > { %2466 = vmatmul.mubr.msk.f32.vlgmr.msra.gmra.mrb[4].mxu1 %vm555_vm3, %v729_v5 }
 0x4b3   : > { %v2617_v7 = vpop.eup %2616  ;;  %2469 = vmatpush3.msra.mxu1 %v808_v6  ;;  %2470 = vmatprep.mubr.msk.f32.mxu1 %vm2667_vm2, %v2666_v38 }
 0x4b4   : > { %v730_v8 = vmul.f32 %v2617_v7, %v2613_v62  ;;  %2478 = vmatprep.subr.mxu1 %v2666_v38  ;;  %v967_v10 = vpop.permute.xlu1 %966 }
 0x4b6   : > { %2471 = vmatmul.mubr.msk.f32.vlgmr.msra.gmra.mrb[6].mxu1 %vm555_vm3, %v730_v8 }
 0x4b7   : > { %2480 = vmatprep.mubr.msk.f32.mxu1 %vm2667_vm2, %v2666_v38 }
 0x4b8   : > { %v1045_v16 = vpop.permute.xlu1 %1044 }
 0x4ba   : > { %2479 = vmatpush3.xpose.msk.msra.mxu1 %vm555_vm3, %v969_v9 }
 0x4bb   : > { %2488 = vmatprep.subr.mxu1 %v2666_v38 }
 0x4bc   : > { %v1384_v31 = vpop.permute.xlu1 %1383 }
 0x4bd   : > { %2481 = vmatmul.mubr.msk.f32.vlgmr.msra.gmra.mrb[8].mxu1 %vm555_vm3, %v967_v10 }
 0x4be   : > { %2490 = vmatprep.mubr.msk.f32.mxu1 %vm2667_vm2, %v2666_v38 }
 0x585   : > { %v803_v11 = vpop.f32.mrb[4].mxu1 }
 0x586   : > { %v2467_v12 = vpop.f32.mrb[5].mxu1  ;;  %2475 = vmatprep.mubr.msk.f32.mxu0 %vm555_vm3, %v803_v11 }
 0x589   : > { %v879_v13 = vpop.f32.mrb[6].mxu1 }
 0x58a   : > { %v2472_v15 = vpop.f32.mrb[7].mxu1  ;;  %2476 = vmatmul.mubr.msk.f32.vlgmr.msra.gmra.mrb[2].mxu0 %vm555_vm3, %v879_v13 }
 0x58b   : > { %2484 = vmatpush3.xpose.msk.msra.mxu0 %vm555_vm3, %v1047_v14  ;;  %2485 = vmatprep.mubr.msk.f32.mxu0 %vm2667_vm2, %v2666_v38  ;;  %v541_v14 = vld [vmem:[%s2760_s21 + $0x10] sm:$0xff] }
 0x58c   : > { %2493 = vmatprep.subr.mxu0 %v2666_v38 }
 0x58e   : > { %2486 = vmatmul.mubr.msk.f32.vlgmr.msra.gmra.mrb[4].mxu0 %vm555_vm3, %v1045_v16 }
 0x58f   : > { %2495 = vmatprep.mubr.msk.f32.mxu0 %vm2667_vm2, %v2666_v38 }
 0x590   : > { %v1040_v17 = vpop.f32.mrb[8].mxu1 }
 0x591   : > { %v1122_v18 = vmul.f32 0.35355338, %v1040_v17  ;;  %v2482_v19 = vpop.f32.mrb[9].mxu1 }
 0x593   : > { %v1124_v20 = vsel %vm555_vm3, %v1122_v18, -inf }
 0x594   : > { %1125 = vmax.xlane.f32.xlu0 %v1124_v20 }
 0x5aa   : > { %1146 = vrot.lane.b32.xlu0 %v2820_v43, %s2673_s12 }
 0x5ae   : > { %1381 = vrot.lane.b32.xlu0 %v2820_v43, %s2674_s17 }
 0x5b2   : > { %1459 = vrot.lane.b32.xlu0 %v2818_v41, %s2674_s17 }
 0x621   : > { %v1126_v21 = vpop.xlane.xlu0 %1125 }
 0x622   : > { %v1130_v22 = vsub.f32 %v1122_v18, %v1126_v21 }
 0x624   : > { %v1132_v23 = vmul.f32 1.442695, %v1130_v22 }
 0x625   : > { %v1147_v24 = vpop.permute.xlu0 %1146 }
 0x626   : > { %2618 = vpow2.f32 %v1132_v23  ;;  %2489 = vmatpush3.msra.mxu1 %v1147_v24 }
 0x627   : > { %2503 = vmatprep.subr.mxu1 %v2666_v38 }
 0x629   : > { %v1382_v36 = vpop.permute.xlu0 %1381 }
 0x62d   : > { %v1460_v40 = vpop.permute.xlu0 %1459 }
 0x630   : > { %v2619_v25 = vpop.eup %2618 }
 0x631   : > { %v1136_v26 = vsel %vm555_vm3, %v2619_v25, 0.0 }
 0x632   : > { %1137 = vadd.xlane.f32.xlu1 %v1136_v26 }
 0x643   : > { %1461 = vrot.lane.b32.xlu1 %v2818_v41, %s2672_s16 }
 0x661   : > { %v1118_v27 = vpop.f32.mrb[4].mxu0 }
 0x662   : > { %v1123_v28 = vmul.f32 0.35355338, %v1118_v27  ;;  %v2487_v29 = vpop.f32.mrb[5].mxu0 }
 0x664   : > { %v1127_v30 = vsel %vm555_vm3, %v1123_v28, -inf }
 0x667   : > { %1128 = vmax.xlane.f32.xlu1 %v1127_v30 }
 0x6bf   : > { %v1138_v32 = vpop.xlane.xlu1 %1137 }
 0x6c0   : > { %2620 = vrcp.f32 %v1138_v32 }
 0x6c3   : > { %v1462_v39 = vpop.permute.xlu1 %1461 }
 0x6ca   : > { %v2621_v33 = vpop.eup %2620 }
 0x6cb   : > { %v1144_v34 = vmul.f32 %v2621_v33, %v2619_v25 }
 0x6cd   : > { %2491 = vmatmul.mubr.msk.f32.vlgmr.msra.gmra.mrb[10].mxu1 %vm555_vm3, %v1144_v34 }
 0x6ce   : > { %2504 = vmatpush3.xpose.msk.msra.mxu1 %vm555_vm3, %v1384_v31  ;;  %2505 = vmatprep.mubr.msk.f32.mxu1 %vm2667_vm2, %v2666_v38 }
 0x6cf   : > { %2508 = vmatprep.subr.mxu1 %v2666_v38 }
 0x6d1   : > { %2506 = vmatmul.mubr.msk.f32.vlgmr.msra.gmra.mrb[12].mxu1 %vm555_vm3, %v1382_v36 }
 0x6d2   : > { %2509 = vmatpush3.xpose.msk.msra.mxu1 %vm555_vm3, %v1462_v39  ;;  %2510 = vmatprep.mubr.msk.f32.mxu1 %vm2667_vm2, %v2666_v38 }
 0x6d3   : > { %2518 = vmatprep.subr.mxu1 %v2666_v38 }
 0x6d5   : > { %2511 = vmatmul.mubr.msk.f32.vlgmr.msra.gmra.mrb[14].mxu1 %vm555_vm3, %v1460_v40 }
 0x6d6   : > { %2520 = vmatprep.mubr.msk.f32.mxu1 %vm2667_vm2, %v2666_v38 }
 0x6f4   : > { %v1129_v42 = vpop.xlane.xlu1 %1128 }
 0x6f5   : > { %v1131_v44 = vsub.f32 %v1123_v28, %v1129_v42 }
 0x6f7   : > { %v1134_v45 = vmul.f32 1.442695, %v1131_v44 }
 0x6f9   : > { %2622 = vpow2.f32 %v1134_v45 }
 0x703   : > { %v2623_v46 = vpop.eup %2622 }
 0x704   : > { %v1139_v47 = vsel %vm555_vm3, %v2623_v46, 0.0 }
 0x705   : > { %1140 = vadd.xlane.f32.xlu0 %v1139_v47 }
 0x71b   : > { %1222 = vrot.lane.b32.xlu0 %v2818_v41, %s2673_s12 }
 0x71f   : > { %1637 = vrot.lane.b32.xlu0 %v2818_v41, %s2675_s24 }
 0x723   : > { %1798 = vrot.lane.b32.xlu0 %v2820_v43, %s2676_s19 }
 0x727   : > { %1876 = vrot.lane.b32.xlu0 %v2818_v41, %s2676_s19 }
 0x72b   : > { %1796 = vrot.lane.b32.xlu0 %v2820_v43, %s2677_s20 }
 0x792   : > { %v1141_v48 = vpop.xlane.xlu0 %1140 }
 0x793   : > { %2624 = vrcp.f32 %v1141_v48 }
 0x796   : > { %v1223_v49 = vpop.permute.xlu0 %1222 }
 0x797   : > { %2494 = vmatpush3.msra.mxu0 %v1223_v49 }
 0x798   : > { %2498 = vmatprep.subr.mxu0 %v540_v63 }
 0x79a   : > { %v1638_v50 = vpop.permute.xlu0 %1637 }
 0x79b   : > { %2519 = vmatpush3.msra.mxu1 %v1638_v50 }
 0x79c   : > { %2528 = vmatprep.subr.mxu1 %v2666_v38 }
 0x79d   : > { %v2625_v51 = vpop.eup %2624 }
 0x79e   : > { %v1145_v52 = vmul.f32 %v2625_v51, %v2623_v46  ;;  %v1799_v16 = vpop.permute.xlu0 %1798 }
 0x7a0   : > { %v1218_v53 = vpop.f32.mrb[10].mxu1  ;;  %2496 = vmatmul.mubr.msk.f32.vlgmr.msra.gmra.mrb[6].mxu0 %vm555_vm3, %v1145_v52 }
 0x7a1   : > { %v2492_v54 = vpop.f32.mrb[11].mxu1  ;;  %2500 = vmatprep.mubr.msk.f32.mxu0 %vm555_vm3, %v1218_v53  ;;  %2499 = vmatpush3.msra.mxu0 %v540_v63 }
 0x7a2   : > { %2513 = vmatprep.subr.mxu0 %v2666_v38  ;;  %v1877_v20 = vpop.permute.xlu0 %1876 }
 0x7a4   : > { %v1455_v55 = vpop.f32.mrb[12].mxu1 }
 0x7a5   : > { %v1537_v56 = vmul.f32 0.35355338, %v1455_v55  ;;  %v2507_v57 = vpop.f32.mrb[13].mxu1 }
 0x7a6   : > { %v1797_v22 = vpop.permute.xlu0 %1796  ;;  %v542_v57 = vld [vmem:[%s2760_s21 + $0x18] sm:$0xff] }
 0x7a7   : > { %v1539_v58 = vsel %vm555_vm3, %v1537_v56, -inf }
 0x7a8   : > { %1540 = vmax.xlane.f32.xlu1 %v1539_v58  ;;  %v1533_v59 = vpop.f32.mrb[14].mxu1 }
 0x7a9   : > { %v1538_v60 = vmul.f32 0.35355338, %v1533_v59  ;;  %v2512_v61 = vpop.f32.mrb[15].mxu1 }
 0x7aa   : > { %v2353_v61 = vld [vmem:[%s383_s29] ss:$0 sm:$0xff] }
 0x7ab   : > { %v1542_v62 = vsel %vm555_vm3, %v1538_v60, -inf }
 0x7ac   : > { %1543 = vmax.xlane.f32.xlu1 %v1542_v62  ;;  %v551_v62 = vadd.f32 %v2353_v61, %v2806_v37 }
 0x835   : > { %v1541_v0 = vpop.xlane.xlu1 %1540 }
 0x836   : > { %v1545_v1 = vsub.f32 %v1537_v56, %v1541_v0  ;;  %v550_v0 = vadd.f32 %v2353_v61, %v2802_v35 }
 0x838   : > { %v1547_v2 = vmul.f32 1.442695, %v1545_v1 }
 0x839   : > { %v1544_v3 = vpop.xlane.xlu1 %1543 }
 0x83a   : > { %2626 = vpow2.f32 %v1547_v2  ;;  %v1546_v4 = vsub.f32 %v1538_v60, %v1544_v3 }
 0x83c   : > { %v1549_v5 = vmul.f32 1.442695, %v1546_v4 }
 0x83e   : > { %2628 = vpow2.f32 %v1549_v5 }
 0x844   : > { %v2627_v6 = vpop.eup %2626 }
 0x845   : > { %v1551_v7 = vsel %vm555_vm3, %v2627_v6, 0.0 }
 0x846   : > { %1552 = vadd.xlane.f32.xlu1 %v1551_v7 }
 0x848   : > { %v2629_v8 = vpop.eup %2628 }
 0x849   : > { %v1554_v9 = vsel %vm555_vm3, %v2629_v8, 0.0 }
 0x84a   : > { %1555 = vadd.xlane.f32.xlu1 %v1554_v9 }
 0x85b   : > { %1561 = vrot.lane.b32.xlu1 %v2820_v43, %s2675_s24 }
 0x85f   : > { %1874 = vrot.lane.b32.xlu1 %v2818_v41, %s2677_s20 }
 0x873   : > { %v1294_v10 = vpop.f32.mrb[6].mxu0 }
 0x874   : > { %v2497_v11 = vpop.f32.mrb[7].mxu0  ;;  %2501 = vmatmul.mubr.msk.f32.vlgmr.msra.gmra.mrb[2].mxu0 %vm555_vm3, %v1294_v10 }
 0x875   : > { %2515 = vmatprep.mubr.msk.f32.mxu0 %vm2667_vm2, %v2666_v38 }
 0x8d3   : > { %v1553_v12 = vpop.xlane.xlu1 %1552 }
 0x8d4   : > { %2630 = vrcp.f32 %v1553_v12 }
 0x8d7   : > { %v1556_v13 = vpop.xlane.xlu1 %1555 }
 0x8d8   : > { %2632 = vrcp.f32 %v1556_v13 }
 0x8db   : > { %v1562_v15 = vpop.permute.xlu1 %1561 }
 0x8dc   : > { %2514 = vmatpush3.msra.mxu0 %v1562_v15 }
 0x8dd   : > { %2523 = vmatprep.subr.mxu0 %v541_v14 }
 0x8de   : > { %v2631_v17 = vpop.eup %2630 }
 0x8df   : > { %v1559_v18 = vmul.f32 %v2631_v17, %v2627_v6  ;;  %v1875_v27 = vpop.permute.xlu1 %1874 }
 0x8e1   : > { %2516 = vmatmul.mubr.msk.f32.vlgmr.msra.gmra.mrb[8].mxu0 %vm555_vm3, %v1559_v18 }
 0x8e2   : > { %v2633_v19 = vpop.eup %2632  ;;  %2524 = vmatpush3.msra.mxu0 %v541_v14 }
 0x8e3   : > { %v1560_v21 = vmul.f32 %v2633_v19, %v2629_v8  ;;  %2533 = vmatprep.subr.mxu0 %v2666_v38 }
 0x8e5   : > { %2521 = vmatmul.mubr.msk.f32.vlgmr.msra.gmra.mrb[16].mxu1 %vm555_vm3, %v1560_v21 }
 0x8e6   : > { %2529 = vmatpush3.xpose.msk.msra.mxu1 %vm555_vm3, %v1799_v16  ;;  %2530 = vmatprep.mubr.msk.f32.mxu1 %vm2667_vm2, %v2666_v38 }
 0x8e7   : > { %2538 = vmatprep.subr.mxu1 %v2666_v38 }
 0x8e9   : > { %2531 = vmatmul.mubr.msk.f32.vlgmr.msra.gmra.mrb[18].mxu1 %vm555_vm3, %v1797_v22 }
 0x8ea   : > { %2540 = vmatprep.mubr.msk.f32.mxu1 %vm2667_vm2, %v2666_v38 }
 0x9b4   : > { %v1633_v23 = vpop.f32.mrb[8].mxu0 }
 0x9b5   : > { %v2517_v24 = vpop.f32.mrb[9].mxu0  ;;  %2525 = vmatprep.mubr.msk.f32.mxu0 %vm555_vm3, %v1633_v23 }
 0x9b8   : > { %v1709_v25 = vpop.f32.mrb[16].mxu1 }
 0x9b9   : > { %v2522_v26 = vpop.f32.mrb[17].mxu1  ;;  %2526 = vmatmul.mubr.msk.f32.vlgmr.msra.gmra.mrb[2].mxu0 %vm555_vm3, %v1709_v25 }
 0x9ba   : > { %2534 = vmatpush3.xpose.msk.msra.mxu0 %vm555_vm3, %v1877_v20  ;;  %2535 = vmatprep.mubr.msk.f32.mxu0 %vm2667_vm2, %v2666_v38 }
 0x9bb   : > { %2543 = vmatprep.subr.mxu0 %v2666_v38 }
 0x9bc   : > { %v1870_v28 = vpop.f32.mrb[18].mxu1 }
 0x9bd   : > { %v1952_v29 = vmul.f32 0.35355338, %v1870_v28  ;;  %v2532_v30 = vpop.f32.mrb[19].mxu1  ;;  %2536 = vmatmul.mubr.msk.f32.vlgmr.msra.gmra.mrb[10].mxu0 %vm555_vm3, %v1875_v27 }
 0x9be   : > { %2545 = vmatprep.mubr.msk.f32.mxu0 %vm2667_vm2, %v2666_v38 }
 0x9bf   : > { %v1954_v31 = vsel %vm555_vm3, %v1952_v29, -inf }
 0x9c0   : > { %1955 = vmax.xlane.f32.xlu0 %v1954_v31 }
 0xa4d   : > { %v1956_v32 = vpop.xlane.xlu0 %1955 }
 0xa4e   : > { %v1960_v33 = vsub.f32 %v1952_v29, %v1956_v32 }
 0xa50   : > { %v1962_v34 = vmul.f32 1.442695, %v1960_v33 }
 0xa52   : > { %2634 = vpow2.f32 %v1962_v34 }
 0xa5c   : > { %v2635_v36 = vpop.eup %2634 }
 0xa5d   : > { %v1966_v39 = vsel %vm555_vm3, %v2635_v36, 0.0 }
 0xa5e   : > { %1967 = vadd.xlane.f32.xlu0 %v1966_v39 }
 0xa90   : > { %v1948_v40 = vpop.f32.mrb[10].mxu0 }
 0xa91   : > { %v1953_v42 = vmul.f32 0.35355338, %v1948_v40  ;;  %v2537_v44 = vpop.f32.mrb[11].mxu0 }
 0xa93   : > { %v1957_v45 = vsel %vm555_vm3, %v1953_v42, -inf }
 0xa94   : > { %1958 = vmax.xlane.f32.xlu1 %v1957_v45 }
 0xaa5   : > { %2052 = vrot.lane.b32.xlu1 %v2818_v41, %s2678_s22 }
 0xaeb   : > { %v1968_v51 = vpop.xlane.xlu0 %1967 }
 0xb21   : > { %v1959_v38 = vpop.xlane.xlu1 %1958 }
 0xb22   : > { %v1961_v46 = vsub.f32 %v1953_v42, %v1959_v38 }
 0xb24   : > { %v1964_v47 = vmul.f32 1.442695, %v1961_v46 }
 0xb25   : > { %v2053_v48 = vpop.permute.xlu1 %2052 }
 0xb26   : > { %2636 = vpow2.f32 %v1964_v47  ;;  %2544 = vmatpush3.msra.mxu0 %v2053_v48 }
 0xb27   : > { %2638 = vrcp.f32 %v1968_v51  ;;  %2548 = vmatprep.subr.mxu0 %v542_v57 }
 0xb30   : > { %v2637_v49 = vpop.eup %2636 }
 0xb31   : > { %v1969_v50 = vsel %vm555_vm3, %v2637_v49, 0.0  ;;  %v2639_v53 = vpop.eup %2638 }
 0xb32   : > { %1970 = vadd.xlane.f32.xlu0 %v1969_v50  ;;  %v1974_v54 = vmul.f32 %v2639_v53, %v2635_v36 }
 0xb48   : > { %1976 = vrot.lane.b32.xlu0 %v2820_v43, %s2678_s22 }
 0xbbf   : > { %v1971_v52 = vpop.xlane.xlu0 %1970 }
 0xbc0   : > { %2640 = vrcp.f32 %v1971_v52 }
 0xbc3   : > { %v1977_v41 = vpop.permute.xlu0 %1976 }
 0xbc4   : > { %2539 = vmatpush3.msra.mxu1 %v1977_v41 }
 0xbc5   : > { %2541 = vmatmul.mubr.msk.f32.vlgmr.msra.gmra.mrb[20].mxu1 %vm555_vm3, %v1974_v54 }
 0xbca   : > { %v2641_v55 = vpop.eup %2640 }
 0xbcb   : > { %v1975_v56 = vmul.f32 %v2641_v55, %v2637_v49 }
 0xbcd   : > { %2546 = vmatmul.mubr.msk.f32.vlgmr.msra.gmra.mrb[12].mxu0 %vm555_vm3, %v1975_v56 }
 0xbce   : > { %2549 = vmatpush3.msra.mxu0 %v542_v57 }
 0xc98   : > { %v2048_v58 = vpop.f32.mrb[20].mxu1 }
 0xc99   : > { %v2542_v43 = vpop.f32.mrb[21].mxu1  ;;  %2550 = vmatprep.mubr.msk.f32.mxu0 %vm555_vm3, %v2048_v58 }
 0xca0   : > { %v2124_v59 = vpop.f32.mrb[12].mxu0 }
 0xca1   : > { %v2547_v60 = vpop.f32.mrb[13].mxu0  ;;  %2551 = vmatmul.mubr.msk.f32.vlgmr.msra.gmra.mrb[2].mxu0 %vm555_vm3, %v2124_v59 }
 0xd74   : > { %v2552_v63 = vpop.f32.mrb[2].mxu0 }
 0xd75   : > { %v2561_v1 = vadd.f32 %v2552_v63, %v551_v62  ;;  %v2200_v2 = vpop.f32.mrb[3].mxu0 }
 0xd76   : > { %v2562_v3 = vadd.f32 %v2200_v2, %v550_v0 }
 0xd77   : > { %2212 = vst.msk [vmem:[%s2982_s7 + $0x8] sm:$0xff] %vm401_vm1, %v2561_v1 }
 0xd78   : > { %2211 = vst.msk [vmem:[%s2982_s7] sm:$0xff] %vm401_vm1, %v2562_v3 }
 0xd79 PF: > { %s17_s26 = sadd.s32 1, %s2664_s26   ;;  %s2983_s24 = smov %s2660_s25 }
 0xd7a   : > { %p14_p6 = scmp.ge.s32.totalorder %s17_s26, 4   ;;  %s2984_s25 = smov %s2986_s27 }
 0xd7c   :  { %16 = sbr.rel (!%p14_p6) target bundleno = 2 (0x2), region = 100 }

</bundles_post_ra>
